<compile_context>
chip_gen: v5e
topology: v5e:2x2
jax: 0.10.0
libtpu: 0.0.40
codegen_flags: <defaults>
</compile_context>

<pallas_src>
import functools

import jax
import jax.numpy as jnp
from jax.experimental import pallas as pl
from jax.experimental.pallas import tpu as pltpu


def _round_up(x, m):
    return ((x + m - 1) // m) * m


def classblock_kernel(x_ref, ss_ref, wt_ref, b_ref, o_ref):
    """One batch tile: BN-affine (f32, VPU) -> LeakyReLU(0.1) -> bf16 matmul (MXU, f32 acc)."""
    x = x_ref[...].astype(jnp.float32)                       # (TB, Dp)
    h = x * ss_ref[0:1, :] + ss_ref[1:2, :]                  # folded BatchNorm1d (eval mode)
    h = jnp.where(h >= 0, h, jnp.float32(0.1) * h)           # LeakyReLU(0.1)
    out = jnp.dot(h.astype(wt_ref.dtype), wt_ref[...],       # bf16 x bf16 -> f32 acc
                  preferred_element_type=jnp.float32)
    o_ref[...] = out + b_ref[...]                            # (TB, Cp), lane-dense f32 store


@functools.partial(jax.jit, static_argnames=("tb",))
def class_block_forward(x, params, *, tb=512):
    """x: (B, D); returns logits (B, class_num). (y is unused on the linear path.)"""
    gamma, beta, running_mean, running_var, eps, w, b = (
        params["gamma"], params["beta"], params["running_mean"],
        params["running_var"], params["eps"], params["w"], params["b"],
    )
    B, D = x.shape
    C = w.shape[0]

    # ---- wrapper-side glue (plain JAX): BN folding, padding, dtype casts ----
    # Pad D / C to lane-/MXU-aligned multiples of 128 (already multiples of 256 for
    # realistic D=2048, C rounds to 256-friendly sizes when large).
    LANE = 128
    Dp = _round_up(D, LANE)
    Cp = _round_up(C, LANE)
    TB = min(tb, _round_up(B, 8))            # batch tile (sublane-aligned), capped for VMEM
    Bp = _round_up(B, TB)

    scale = gamma / jnp.sqrt(running_var + eps)              # (D,)
    shift = beta - running_mean * scale                      # (D,)
    scale_shift = jnp.stack([scale, shift], axis=0).astype(jnp.float32)       # (2, D)
    scale_shift = jnp.pad(scale_shift, ((0, 0), (0, Dp - D)))                 # (2, Dp)

    x_p = jnp.pad(x, ((0, Bp - B), (0, Dp - D))).astype(jnp.bfloat16)         # (Bp, Dp) bf16
    wt_p = jnp.pad(w.T, ((0, Dp - D), (0, Cp - C))).astype(jnp.bfloat16)      # (Dp, Cp) bf16
    bias_p = jnp.pad(b.reshape(1, C), ((0, 0), (0, Cp - C))).astype(jnp.float32)  # (1, Cp)

    grid = (Bp // TB,)
    cost = pl.CostEstimate(
        flops=2 * Bp * Dp * Cp,
        bytes_accessed=(x_p.size * 2 + wt_p.size * 2 + Bp * Cp * 4
                        + scale_shift.size * 4 + bias_p.size * 4),
        transcendentals=0,
    )

    out_p = pl.pallas_call(
        classblock_kernel,
        out_shape=jax.ShapeDtypeStruct((Bp, Cp), jnp.float32),
        grid=grid,
        in_specs=[
            pl.BlockSpec((TB, Dp), lambda i: (i, 0)),   # x tile: pipelined over the grid
            pl.BlockSpec((2, Dp), lambda i: (0, 0)),    # scale/shift: resident
            pl.BlockSpec((Dp, Cp), lambda i: (0, 0)),   # W^T: resident
            pl.BlockSpec((1, Cp), lambda i: (0, 0)),    # bias: resident
        ],
        out_specs=pl.BlockSpec((TB, Cp), lambda i: (i, 0)),
        compiler_params=pltpu.CompilerParams(
            dimension_semantics=("parallel",),          # shards batch tiles across v7x's 2 TCs
            vmem_limit_bytes=48 * 1024 * 1024,          # safe on v7x (64 MiB) and v5e/v6e
        ),
        cost_estimate=cost,
    )(x_p, scale_shift, wt_p, bias_p)

    return out_p[:B, :C]


def class_block_reference(x, params):
    """Pure-JAX f32 reference of the same forward pass (correctness check)."""
    scale = params["gamma"] / jnp.sqrt(params["running_var"] + params["eps"])
    h = (x - params["running_mean"]) * scale + params["beta"]
    h = jnp.where(h >= 0, h, 0.1 * h)
    return h @ params["w"].T + params["b"]


if __name__ == "__main__":
    # Small shapes consistent with ClassBlock(input_dim, class_num, metric='linear').
    B, input_dim, class_num = 8, 32, 16

    key = jax.random.PRNGKey(0)
    kx, kg, kb, km, kv, kw, kbias = jax.random.split(key, 7)

    x = jax.random.normal(kx, (B, input_dim), dtype=jnp.float32)
    y = None  # unused for the linear-classifier path

    params = {
        # BatchNorm1d parameters / running stats (deterministic, non-trivial).
        "gamma": 1.0 + 0.1 * jax.random.normal(kg, (input_dim,), dtype=jnp.float32),
        "beta": 0.1 * jax.random.normal(kb, (input_dim,), dtype=jnp.float32),
        "running_mean": 0.1 * jax.random.normal(km, (input_dim,), dtype=jnp.float32),
        "running_var": jnp.abs(1.0 + 0.1 * jax.random.normal(kv, (input_dim,), dtype=jnp.float32)),
        "eps": jnp.float32(1e-5),
        # nn.Linear(input_dim, class_num): weight (class_num, input_dim), bias (class_num,)
        "w": jax.random.normal(kw, (class_num, input_dim), dtype=jnp.float32)
             * (1.0 / jnp.sqrt(input_dim)),
        "b": 0.01 * jax.random.normal(kbias, (class_num,), dtype=jnp.float32),
    }

    out = class_block_forward(x, params)
    out = jax.block_until_ready(out)

    ref = class_block_reference(x, params)
    assert out.shape == (B, class_num)
    # bf16 activations/weights on the matmul path -> relaxed tolerance vs f32 reference.
    assert jnp.allclose(out, ref, atol=3e-2, rtol=3e-2), "mismatch vs reference"

    # TODO(synk): cosface/arcface/sphereface metric heads (AddMarginProduct etc.) are
    # defined outside this module and are not implemented here; only the 'linear' path is.
    print("KERNEL_OK")
</pallas_src>

<mosaic_0001>
module attributes {stable_mosaic.version = 11 : i64} {
  func.func @classblock_kernel(%arg0: i32, %arg1: memref<8x128xbf16, #tpu.memory_space<vmem>>, %arg2: memref<2x128xf32, #tpu.memory_space<vmem>>, %arg3: memref<128x128xbf16, #tpu.memory_space<vmem>>, %arg4: memref<1x128xf32, #tpu.memory_space<vmem>>, %arg5: memref<8x128xf32, #tpu.memory_space<vmem>>) attributes {dimension_semantics = [#tpu.dimension_semantics<parallel>], iteration_bounds = array<i64: 1>, scalar_prefetch = 0 : i64, scratch_operands = 0 : i64, tpu.core_type = #tpu.core_type<tc>, window_params = [{transform_indices = @transform_0, window_bounds = array<i64: 8, 128>}, {pipeline_mode = #tpu.pipeline_mode<synchronous>, transform_indices = @transform_1, window_bounds = array<i64: 2, 128>}, {pipeline_mode = #tpu.pipeline_mode<synchronous>, transform_indices = @transform_2, window_bounds = array<i64: 128, 128>}, {pipeline_mode = #tpu.pipeline_mode<synchronous>, transform_indices = @transform_3, window_bounds = array<i64: 1, 128>}, {transform_indices = @transform_4, window_bounds = array<i64: 8, 128>}]} {
    %c0 = arith.constant 0 : index
    %c0_0 = arith.constant 0 : index
    %0 = vector.load %arg1[%c0, %c0_0] : memref<8x128xbf16, #tpu.memory_space<vmem>>, vector<8x128xbf16>
    %1 = arith.extf %0 : vector<8x128xbf16> to vector<8x128xf32>
    %c0_1 = arith.constant 0 : index
    %c0_2 = arith.constant 0 : index
    %2 = vector.load %arg2[%c0_1, %c0_2] : memref<2x128xf32, #tpu.memory_space<vmem>>, vector<1x128xf32>
    %3 = vector.broadcast %2 : vector<1x128xf32> to vector<8x128xf32>
    %4 = arith.mulf %1, %3 : vector<8x128xf32>
    %c1 = arith.constant 1 : index
    %c0_3 = arith.constant 0 : index
    %5 = vector.load %arg2[%c1, %c0_3] : memref<2x128xf32, #tpu.memory_space<vmem>>, vector<1x128xf32>
    %6 = vector.broadcast %5 : vector<1x128xf32> to vector<8x128xf32>
    %7 = arith.addf %4, %6 : vector<8x128xf32>
    %cst = arith.constant 0.000000e+00 : f32
    %8 = vector.broadcast %cst : f32 to vector<8x128xf32>
    %9 = arith.cmpf oge, %7, %8 : vector<8x128xf32>
    %cst_4 = arith.constant 1.000000e-01 : f32
    %10 = vector.broadcast %cst_4 : f32 to vector<8x128xf32>
    %11 = arith.mulf %10, %7 : vector<8x128xf32>
    %12 = arith.select %9, %7, %11 : vector<8x128xi1>, vector<8x128xf32>
    %13 = arith.truncf %12 : vector<8x128xf32> to vector<8x128xbf16>
    %c0_5 = arith.constant 0 : index
    %c0_6 = arith.constant 0 : index
    %14 = vector.load %arg3[%c0_5, %c0_6] : memref<128x128xbf16, #tpu.memory_space<vmem>>, vector<128x128xbf16>
    %cst_7 = arith.constant dense<0.000000e+00> : vector<8x128xf32>
    %15 = tpu.matmul %13, %14, %cst_7 {dimension_numbers = #tpu.dot_dimension_numbers<[1], [0], [0], [1], [0, 0, 1, 1], [], []>} : vector<8x128xbf16>, vector<128x128xbf16>, vector<8x128xf32> -> vector<8x128xf32>
    %c0_8 = arith.constant 0 : index
    %c0_9 = arith.constant 0 : index
    %16 = vector.load %arg4[%c0_8, %c0_9] : memref<1x128xf32, #tpu.memory_space<vmem>>, vector<1x128xf32>
    %17 = vector.broadcast %16 : vector<1x128xf32> to vector<8x128xf32>
    %18 = arith.addf %15, %17 : vector<8x128xf32>
    %c0_10 = arith.constant 0 : index
    %c0_11 = arith.constant 0 : index
    %19 = vector.load %arg5[%c0_10, %c0_11] : memref<8x128xf32, #tpu.memory_space<vmem>>, vector<8x128xf32>
    tpu.vector_store %arg5[%c0_10, %c0_11], %18 {strides = array<i32>} : memref<8x128xf32, #tpu.memory_space<vmem>>, vector<8x128xf32>,
    return
  }
  func.func @transform_0(%arg0: i32) -> (i32, i32) {
    %c0_i32 = arith.constant 0 : i32
    %c0_i32_0 = arith.constant 0 : i32
    return %arg0, %c0_i32 : i32, i32
  }
  func.func @transform_1(%arg0: i32) -> (i32, i32) {
    %c0_i32 = arith.constant 0 : i32
    %c0_i32_0 = arith.constant 0 : i32
    %c0_i32_1 = arith.constant 0 : i32
    return %c0_i32, %c0_i32_0 : i32, i32
  }
  func.func @transform_2(%arg0: i32) -> (i32, i32) {
    %c0_i32 = arith.constant 0 : i32
    %c0_i32_0 = arith.constant 0 : i32
    %c0_i32_1 = arith.constant 0 : i32
    return %c0_i32, %c0_i32_0 : i32, i32
  }
  func.func @transform_3(%arg0: i32) -> (i32, i32) {
    %c0_i32 = arith.constant 0 : i32
    %c0_i32_0 = arith.constant 0 : i32
    %c0_i32_1 = arith.constant 0 : i32
    return %c0_i32, %c0_i32_0 : i32, i32
  }
  func.func @transform_4(%arg0: i32) -> (i32, i32) {
    %c0_i32 = arith.constant 0 : i32
    %c0_i32_0 = arith.constant 0 : i32
    return %arg0, %c0_i32 : i32, i32
  }
}

</mosaic_0001>

<bundles_post_ra>
// kernel: class_block_forward.1
= control target key start
LH: loop header
LB: loop body
LE: loop exit
PB: predicated region body
PF: predicated region fallthrough
CT: control target
= control target key end

     0   :  { %s263_s0 = inlined_call_operand.vmem [shape: bf16[8,128], index: 0, kind: input, shape index: {}]   ;;  %s264_s1 = inlined_call_operand.vmem [shape: f32[2,128], index: 1, kind: input, shape index: {}]   ;;  %s265_s2 = inlined_call_operand.vmem [shape: bf16[128,128], index: 2, kind: input, shape index: {}]   ;;  %s266_s3 = inlined_call_operand.vmem [shape: f32[1,128], index: 3, kind: input, shape index: {}]   ;;  %s267_s4 = inlined_call_operand.hbm [shape: f32[8,128], index: 4, kind: output, shape index: {}]  }
   0x1   :  { %v167_v0 = vld [vmem:[%s265_s2 + $0x38] sm:$0xff]  ;;  %v166_v1 = vld [vmem:[%s265_s2 + $0x30] sm:$0xff] }
   0x2   :  { %98 = vmatpush.bf16.msra.mxu0 %v167_v0 }
   0x3   :  { %9 = vsyncpa [#allocation3], 0  ;;  %v165_v2 = vld [vmem:[%s265_s2 + $0x28] sm:$0xff]  ;;  %v18_v3 = vld [vmem:[%s263_s0] sm:$0xf]  ;;  %s198_s11 = smov [#allocation2]  }
   0x4   :  { %v164_v4 = vld [vmem:[%s265_s2 + $0x20] sm:$0xff]  ;;  %v19_v5 = vunpack.c.l.bf16 %v18_v3  ;;  %v163_v7 = vld [vmem:[%s265_s2 + $0x18] sm:$0xff]  ;;  %v162_v10 = vld [vmem:[%s265_s2 + $0x10] sm:$0xff]  ;;  %s117_s12 = sshll.u32 %s198_s11, 4  ;;  %s119_s15 = sshll.u32 %s267_s4, 4  ;;  %s118_s12 = int_to_ptr.vmem [resolvable:$true] %s117_s12  ;;  %s120_s15 = int_to_ptr.hbm [resolvable:$true] %s119_s15 }
   0x5   :  { %v169_v6 = vld [vmem:[%s264_s1] ss:$0 sm:$0xff]  ;;  %v170_v9 = vld [vmem:[%s264_s1 + $0x1] ss:$0 sm:$0xff]  ;;  %v161_v12 = vld [vmem:[%s265_s2 + $0x8] sm:$0xff] }
   0x6   :  { %99 = vmatpush.bf16.msra.mxu0 %v166_v1  ;;  %v22_v8 = vmul.f32 %v169_v6, %v19_v5  ;;  %v160_v14 = vld [vmem:[%s265_s2] sm:$0xff] }
   0x7   :  { %v171_v17 = vld [vmem:[%s266_s3] ss:$0 sm:$0xff] }
   0x8   :  { %v25_v11 = vadd.f32 %v170_v9, %v22_v8 }
   0xa   :  { %100 = vmatpush.bf16.msra.mxu0 %v165_v2  ;;  %v27_v13 = vmul.f32 0.1, %v25_v11  ;;  %vm26_vm0 = vcmp.ge.f32.partialorder %v25_v11, 0.0 }
   0xc   :  { %v28_v15 = vsel %vm26_vm0, %v25_v11, %v27_v13 }
   0xd   :  { %v29_v16 = vpack.c.bf16 %v28_v15, %v28_v15 }
   0xe   :  { %101 = vmatpush.bf16.msra.mxu0 %v164_v4 }
  0x12   :  { %102 = vmatpush.bf16.msra.mxu0 %v163_v7 }
  0x16   :  { %103 = vmatpush.bf16.msra.mxu0 %v162_v10 }
  0x1a   :  { %104 = vmatpush.bf16.msra.mxu0 %v161_v12 }
  0x1e   :  { %105 = vmatpush.bf16.msra.mxu0 %v160_v14 }
  0x21   :  { %106 = vmatmul.bf16.vlgmr.msra.gmra.mxu0 %v29_v16 }
  0x9e   :  { %v107_v18 = vpop.f32.mrf.mxu0 }
  0x9f   :  { %v108_v19 = vadd.f32 %v171_v17, %v107_v18 }
  0xa1   :  { %111 = vst [vmem:[#allocation2] sm:$0xff] %v108_v19 }
  0xa2   :  { %122 = dma.vmem_to_hbm [thread:$0]  %s118_s12, 128, %s120_s15, [#allocation3]  }
  0xa6   :  { %v109_v20 = vpop.f32.mrf.mxu0 }
  0xa7   :  { %196 = dma.done.wait [#allocation3], 128  }
  0xa8   :  { %197 = vsyncadd [#allocation3], 4294967168 }
  0xa9   :  { %127 = vsyncpa [#allocation3], 1 }

</bundles_post_ra>
